<compile_context>
chip_gen: v7x
topology: tpu7x:2x2x1
jax: 0.10.0
libtpu: 0.0.40
codegen_flags: <defaults>
</compile_context>

<pallas_src>
import jax
import jax.numpy as jnp
from jax.experimental import pallas as pl
from jax.experimental.pallas import tpu as pltpu


def _linear_permute_kernel(x_ref, wb_ref, o_ref):
    """Fused Linear + permute(0, 2, 1).

    x_ref:  (S*IN,)     f32 in SMEM  (input rows flattened, read as scalars)
    wb_ref: (OUT, IN+1) f32 in VMEM  (PyTorch Linear weight with bias column)
    o_ref:  (1, OUT, S) f32 in VMEM  -- already the permuted output layout:
            o[0, o, s] = sum_k wb[o, k] * x[s*IN + k] + wb[o, IN]
    """
    OUT, in_p1 = wb_ref.shape
    IN = in_p1 - 1
    S = x_ref.shape[0] // IN

    w_cols = [wb_ref[:, k:k + 1] for k in range(IN)]   # each (OUT, 1)
    b = wb_ref[:, IN:IN + 1]                            # (OUT, 1) bias column

    # K- and S-unrolled VPU scalar-broadcast FMAs; each output column of the
    # permuted result is a scalar-weighted sum of weight columns plus bias.
    cols = []
    for s in range(S):
        col = b                                         # bias baked into FMA chain
        for k in range(IN):
            col = col + w_cols[k] * x_ref[s * IN + k]   # scalar * (OUT, 1)
        cols.append(col)

    # Single store of the whole (OUT, S) block (one masked vst instead of S).
    o_ref[0] = jnp.concatenate(cols, axis=1)


def prepare_params(weight, bias):
    """One-time parameter prep: fuse weight and bias into a single operand."""
    out_dim = weight.shape[0]
    return jnp.concatenate(
        [weight.astype(jnp.float32), bias.reshape(out_dim, 1).astype(jnp.float32)],
        axis=1,
    )  # (OUT, IN+1)


@jax.jit
def model_forward(x3, wb):
    """Reproduces Model.forward: x3 (1, S, IN) -> (1, OUT, S)."""
    B, S, IN = x3.shape                   # (1, 2, 2)
    OUT = wb.shape[0]                     # 4
    x_flat = x3.reshape(S * IN)           # metadata-only reshape (B == 1)

    cost = pl.CostEstimate(
        flops=2 * S * IN * OUT,
        transcendentals=0,
        bytes_accessed=(S * IN + OUT * (IN + 1) + OUT * S) * 4,
    )

    out = pl.pallas_call(
        _linear_permute_kernel,
        out_shape=jax.ShapeDtypeStruct((B, OUT, S), jnp.float32),
        # No grid: single invocation, whole arrays, no pipeline bookkeeping.
        in_specs=[
            pl.BlockSpec(memory_space=pltpu.MemorySpace.SMEM),   # x (S*IN,)
            pl.BlockSpec(memory_space=pltpu.MemorySpace.VMEM),   # wb (OUT, IN+1)
        ],
        out_specs=pl.BlockSpec(memory_space=pltpu.MemorySpace.VMEM),
        cost_estimate=cost,
    )(x_flat, wb)
    return out                            # (1, OUT, S) == permute(0,2,1).view


if __name__ == "__main__":
    key = jax.random.PRNGKey(0)
    kx, kw, kb = jax.random.split(key, 3)

    # Shapes consistent with the module: x3 (1, 2, 2), Linear(2, 4).
    x3 = jax.random.normal(kx, (1, 2, 2), dtype=jnp.float32)
    weight = jax.random.normal(kw, (4, 2), dtype=jnp.float32) * 0.5
    bias = jax.random.normal(kb, (4,), dtype=jnp.float32) * 0.1

    wb = prepare_params(weight, bias)     # done once, outside the per-call path

    out = model_forward(x3, wb)
    out = jax.block_until_ready(out)

    # Plain-JAX reference of the original module semantics.
    ref = jnp.transpose(x3 @ weight.T + bias, (0, 2, 1)).reshape(1, 4, 2)
    assert out.shape == (1, 4, 2), out.shape
    assert jnp.allclose(out, ref, atol=1e-5, rtol=1e-5)

    print("KERNEL_OK")
</pallas_src>

<mosaic_0001>
module attributes {stable_mosaic.version = 11 : i64} {
  func.func @_linear_permute_kernel(%arg0: memref<4xf32, #tpu.memory_space<smem>>, %arg1: memref<4x3xf32, #tpu.memory_space<vmem>>, %arg2: memref<1x4x2xf32, #tpu.memory_space<vmem>>) attributes {dimension_semantics = [], scalar_prefetch = 0 : i64, scratch_operands = 0 : i64, tpu.core_type = #tpu.core_type<tc>} {
    %c0 = arith.constant 0 : index
    %c0_0 = arith.constant 0 : index
    %0 = vector.load %arg1[%c0, %c0_0] : memref<4x3xf32, #tpu.memory_space<vmem>>, vector<4x1xf32>
    %c0_1 = arith.constant 0 : index
    %c1 = arith.constant 1 : index
    %1 = vector.load %arg1[%c0_1, %c1] : memref<4x3xf32, #tpu.memory_space<vmem>>, vector<4x1xf32>
    %c0_2 = arith.constant 0 : index
    %c2 = arith.constant 2 : index
    %2 = vector.load %arg1[%c0_2, %c2] : memref<4x3xf32, #tpu.memory_space<vmem>>, vector<4x1xf32>
    %c0_3 = arith.constant 0 : index
    %3 = memref.load %arg0[%c0_3] : memref<4xf32, #tpu.memory_space<smem>>
    %4 = vector.broadcast %3 : f32 to vector<4x1xf32>
    %5 = arith.mulf %0, %4 : vector<4x1xf32>
    %6 = arith.addf %2, %5 : vector<4x1xf32>
    %c1_4 = arith.constant 1 : index
    %7 = memref.load %arg0[%c1_4] : memref<4xf32, #tpu.memory_space<smem>>
    %8 = vector.broadcast %7 : f32 to vector<4x1xf32>
    %9 = arith.mulf %1, %8 : vector<4x1xf32>
    %10 = arith.addf %6, %9 : vector<4x1xf32>
    %c2_5 = arith.constant 2 : index
    %11 = memref.load %arg0[%c2_5] : memref<4xf32, #tpu.memory_space<smem>>
    %12 = vector.broadcast %11 : f32 to vector<4x1xf32>
    %13 = arith.mulf %0, %12 : vector<4x1xf32>
    %14 = arith.addf %2, %13 : vector<4x1xf32>
    %c3 = arith.constant 3 : index
    %15 = memref.load %arg0[%c3] : memref<4xf32, #tpu.memory_space<smem>>
    %16 = vector.broadcast %15 : f32 to vector<4x1xf32>
    %17 = arith.mulf %1, %16 : vector<4x1xf32>
    %18 = arith.addf %14, %17 : vector<4x1xf32>
    %19 = tpu.concatenate %10, %18 in 1 : vector<4x1xf32>, vector<4x1xf32> -> vector<4x2xf32>
    %c0_6 = arith.constant 0 : index
    %c0_7 = arith.constant 0 : index
    %c0_8 = arith.constant 0 : index
    %20 = vector.load %arg2[%c0_6, %c0_7, %c0_8] : memref<1x4x2xf32, #tpu.memory_space<vmem>>, vector<1x4x2xf32>
    %21 = vector.shape_cast %20 : vector<1x4x2xf32> to vector<4x2xf32>
    %22 = vector.shape_cast %19 : vector<4x2xf32> to vector<1x4x2xf32>
    tpu.vector_store %arg2[%c0_6, %c0_7, %c0_8], %22 {strides = array<i32>} : memref<1x4x2xf32, #tpu.memory_space<vmem>>, vector<1x4x2xf32>,
    return
  }
}

</mosaic_0001>

<bundles_post_ra>
// kernel: model_forward.1
= control target key start
LH: loop header
LB: loop body
LE: loop exit
PB: predicated region body
PF: predicated region fallthrough
CT: control target
= control target key end

     0   :  { %7 = vsyncpa [#allocation3], 0  ;;  %s125_s0 = inlined_call_operand.vmem [shape: f32[4], index: 0, kind: input, shape index: {}]   ;;  %s126_s1 = inlined_call_operand.vmem [shape: f32[4,3], index: 1, kind: input, shape index: {}]   ;;  %s127_s2 = inlined_call_operand.vmem [shape: f32[1,4,2], index: 2, kind: output, shape index: {}]  }
   0x1   :  { %s14_s11 = sshll.u32 %s125_s0, 4  ;;  %s15_s11 = int_to_ptr.vmem [resolvable:$true] %s14_s11 }
   0x2   :  { %s82_s12 = scalar_lea.vmem %s15_s11, 16  ;;  %p87_p1 = scmp.lt.s32.totalorder %s15_s11, %s15_s11 }
   0x3   :  { %p83_p0 = scmp.ne.s32.totalorder %s15_s11, %s82_s12  ;;  %p88_p2 = scmp.lt.s32.totalorder %s82_s12, %s82_s12 }
   0x5   :  { %p89_p3 = por %p88_p2, %p87_p1 }
   0x7   :  { %p90_p4 = pnand %p89_p3, %p83_p0 }
   0x9   :  { %93 = shalt.err (!%p90_p4)
}
   0xa   :  { %s96_s13 = smov [#allocation2]  }
   0xb   :  { %17 = dma.vmem_to_smem %s15_s11, 16, %s96_s13, [#allocation3]  }
   0xc   :  { %94 = dma.done.wait [#allocation3], 16  }
   0xd   :  { %95 = vsyncadd [#allocation3], 4294967280 }
   0xe   :  { %23 = sfence }
   0xf   :  { %s25_s14 = sld [smem:[#allocation2]]  ;;  %s74_s15 = sld [smem:[#allocation2 + $0x1]]  ;;  %v24_v0 = vld [vmem:[%s126_s1] sm:$0xf]  ;;  %vm65_vm0 = vcmask 7168   ;;  %vm67_vm1 = vcmask 11264  }
  0x10   :  { %s75_s16 = sld [smem:[#allocation2 + $0x2]]  ;;  %s76_s17 = sld [smem:[#allocation2 + $0x3]] }
  0x11   :  { %s97_s0 = smov 2   ;;  %s98_s20 = smov 1  }
  0x12   :  { %s99_s1 = smov 126   ;;  %s100_s21 = smov 127  }
  0x15   :  { %v26_v1 = vstv %s25_s14  ;;  %v34_v3 = vstv %s74_s15 }
  0x16   :  { %v27_v2 = vmul.f32 %v26_v1, %v24_v0  ;;  %v35_v4 = vmul.f32 %v34_v3, %v24_v0  ;;  %v42_v5 = vstv %s75_s16  ;;  %v50_v6 = vstv %s76_s17 }
  0x17   :  { %v43_v7 = vmul.f32 %v42_v5, %v24_v0  ;;  %v51_v8 = vmul.f32 %v50_v6, %v24_v0 }
  0x18   :  { %29 = vrot.lane.b32.xlu0 %v27_v2, %s97_s0  ;;  %37 = vrot.lane.b32.xlu1 %v35_v4, %s98_s20 }
  0x1c   :  { %45 = vrot.lane.b32.xlu0 %v43_v7, %s97_s0  ;;  %53 = vrot.lane.b32.xlu1 %v51_v8, %s98_s20 }
  0x8a   :  { %v30_v9 = vpop.permute.xlu0 %29  ;;  %v38_v11 = vpop.permute.xlu1 %37 }
  0x8b   :  { %v32_v10 = vadd.f32 %v30_v9, %v24_v0 }
  0x8d   :  { %v40_v12 = vadd.f32 %v38_v11, %v32_v10 }
  0x8e   :  { %v46_v13 = vpop.permute.xlu0 %45  ;;  %v54_v15 = vpop.permute.xlu1 %53 }
  0x8f   :  { %v48_v14 = vadd.f32 %v46_v13, %v24_v0  ;;  %58 = vrot.lane.b32.xlu0 %v40_v12, %s99_s1 }
  0x91   :  { %v56_v16 = vadd.f32 %v54_v15, %v48_v14 }
  0x93   :  { %62 = vrot.lane.b32.xlu1 %v56_v16, %s100_s21 }
 0x101   :  { %v59_v17 = vpop.permute.xlu0 %58 }
 0x105   :  { %v63_v18 = vpop.permute.xlu1 %62 }
 0x106   :  { %v66_v19 = vsel %vm65_vm0, %v59_v17, %v63_v18 }
 0x107   :  { %68 = vst.msk [vmem:[%s127_s2] sm:$0xf] %vm67_vm1, %v66_v19 }
 0x108   :  { %73 = vsyncpa [#allocation3], 1 }

</bundles_post_ra>
